<compile_context>
chip_gen: v6e
topology: v6e:2x2x1
jax: 0.10.0
libtpu: 0.0.40
codegen_flags: <defaults>
</compile_context>

<pallas_src>
import math

import jax
import jax.numpy as jnp
from jax.experimental import pallas as pl
from jax.experimental.pallas import tpu as pltpu


def _cdiv(a, b):
    return -(-a // b)


def _round_up(x, m):
    return _cdiv(x, m) * m


def _round_down(x, m):
    return (x // m) * m


def _rope_kernel(pos_top_ref, pos_bot_ref, inv_ref, cos_ref, sin_ref):
    """One output tile of packed rotary cos/sin.

    pos_top_ref : (TM2, R) int32 -- positions of output rows [0, TM2)
    pos_bot_ref : (TM2, R) int32 -- positions of output rows [TM2, TM)
    inv_ref     : (1, HALF) f32  -- unique half frequencies (inv_freq)
    cos_ref/sin_ref : (TM, W) out dtype, W = R * D, D = 2*HALF, W % 128 == 0

    cos/sin are computed once per unique half-frequency (full-lane compute on
    (TM2, W)), then the cat(freqs, freqs) duplication is rebuilt with static
    lane slices + concatenation just before the (lane-dense) stores.
    """
    inv = inv_ref[...]                                   # (1, HALF) f32
    half = inv.shape[1]
    pt = pos_top_ref[...].astype(jnp.float32)            # (TM2, R)
    pb = pos_bot_ref[...].astype(jnp.float32)            # (TM2, R)
    tm2, r_groups = pt.shape

    # Half-angles for two output-row halves per compute row: width
    # 2 * R * HALF == W, a multiple of 128 -> full-lane EUP/VALU work.
    parts = [pt[:, r:r + 1] * inv for r in range(r_groups)]
    parts += [pb[:, r:r + 1] * inv for r in range(r_groups)]
    ang = parts[0] if len(parts) == 1 else jnp.concatenate(parts, axis=-1)

    ch = jnp.cos(ang)                                    # (TM2, W) f32
    sh = jnp.sin(ang)

    def _dup(h, lo, hi):
        # emb = cat(freqs, freqs): duplicate each HALF-wide lane group.
        blocks = []
        for g in range(lo, hi):
            blk = h[:, g * half:(g + 1) * half]
            blocks.append(blk)
            blocks.append(blk)
        return jnp.concatenate(blocks, axis=-1)          # (TM2, (hi-lo)*D)

    cos_ref[0:tm2, :] = _dup(ch, 0, r_groups).astype(cos_ref.dtype)
    cos_ref[tm2:2 * tm2, :] = _dup(ch, r_groups, 2 * r_groups).astype(cos_ref.dtype)
    sin_ref[0:tm2, :] = _dup(sh, 0, r_groups).astype(sin_ref.dtype)
    sin_ref[tm2:2 * tm2, :] = _dup(sh, r_groups, 2 * r_groups).astype(sin_ref.dtype)


def internlm2_rotary_embedding(x, position_ids, inv_freq, *, block_rows=2048):
    """Pallas TPU equivalent of InternLM2RotaryEmbedding.forward.

    Returns (cos, sin), each (B, S, dim), dtype == x.dtype.
    """
    B, S = position_ids.shape
    inv_freq = jnp.asarray(inv_freq, jnp.float32).reshape(-1)
    half = int(inv_freq.shape[0])
    D = 2 * half
    out_dtype = x.dtype
    itemsize = jnp.dtype(out_dtype).itemsize
    # TM must be even (split into two halves) and sublane-tile aligned.
    row_align = 16 if itemsize >= 2 else 32

    # Pack R positions per output row so W = R*D is a multiple of 128 for any
    # head dim (32/64/80/96/128/...), keeping every store full-lane.
    R = (D * 128 // math.gcd(D, 128)) // D               # lcm(D, 128) // D
    W = R * D

    N = B * S
    Np = _cdiv(N, R)

    # Common case: no output padding at all -> post-kernel reshape is a free
    # view and XLA never materializes an unpad copy of cos/sin.
    if N % R == 0 and Np >= row_align:
        Np_out = Np
        needs_slice = False
    else:
        # Tiny or ragged shapes only: pad a handful of rows and slice after.
        Np_out = _round_up(Np, row_align)
        needs_slice = True

    TM = max(row_align, _round_down(min(block_rows, Np_out), row_align))
    grid_n = _cdiv(Np_out, TM)
    # Give v7x's two TensorCores something to split when there is enough work.
    if grid_n == 1 and Np_out >= 2 * row_align:
        TM = _round_up(_cdiv(Np_out, 2), row_align)
        grid_n = _cdiv(Np_out, TM)
    TM2 = TM // 2

    # Positions: pad the (tiny, int32) input to whole tiles so every pos block
    # index is in range; the outputs stay exactly (Np_out, W).
    Np_pos = _round_up(Np_out, TM)
    pos_flat = position_ids.reshape(-1).astype(jnp.int32)
    pad = Np_pos * R - N
    if pad > 0:
        pos_flat = jnp.pad(pos_flat, (0, pad))           # pos 0, never read back
    pos2d = pos_flat.reshape(Np_pos, R)

    inv_half = inv_freq.reshape(1, half)

    cost = pl.CostEstimate(
        flops=int(Np_out * W),
        transcendentals=int(Np_out * W),                 # cos+sin on half the lanes
        bytes_accessed=int(2 * Np_out * W * itemsize + Np_pos * R * 4 + half * 4),
    )

    cos_p, sin_p = pl.pallas_call(
        _rope_kernel,
        out_shape=(
            jax.ShapeDtypeStruct((Np_out, W), out_dtype),
            jax.ShapeDtypeStruct((Np_out, W), out_dtype),
        ),
        grid=(grid_n,),
        in_specs=[
            pl.BlockSpec((TM2, R), lambda i: (2 * i, 0)),       # top half rows
            pl.BlockSpec((TM2, R), lambda i: (2 * i + 1, 0)),   # bottom half rows
            pl.BlockSpec((1, half), lambda i: (0, 0)),          # invariant freqs
        ],
        out_specs=(
            pl.BlockSpec((TM, W), lambda i: (i, 0)),
            pl.BlockSpec((TM, W), lambda i: (i, 0)),
        ),
        compiler_params=pltpu.CompilerParams(
            dimension_semantics=("parallel",),
            vmem_limit_bytes=32 * 1024 * 1024,
        ),
        cost_estimate=cost,
    )(pos2d, pos2d, inv_half)

    # (Np_out, R*D) rows are a contiguous view of (Np_out*R, D).
    cos = cos_p.reshape(Np_out * R, D)
    sin = sin_p.reshape(Np_out * R, D)
    if needs_slice:
        cos = cos[:N]
        sin = sin[:N]
    return cos.reshape(B, S, D), sin.reshape(B, S, D)


def _reference(x, position_ids, inv_freq):
    pos = position_ids.astype(jnp.float32)                  # (B, S)
    freqs = pos[:, :, None] * inv_freq[None, None, :]       # (B, S, HALF)
    emb = jnp.concatenate([freqs, freqs], axis=-1)
    return jnp.cos(emb).astype(x.dtype), jnp.sin(emb).astype(x.dtype)


def _make_inv_freq(dim, base=10000.0):
    # Exactly as in InternLM2RotaryEmbedding.__init__ (scaling_factor unused in forward).
    return 1.0 / (base ** (jnp.arange(0, dim, 2, dtype=jnp.float32) / dim))


if __name__ == "__main__":
    key = jax.random.PRNGKey(0)

    # --- small check (padded fallback path) -------------------------------
    dim, B, S, hidden = 32, 2, 8, 32
    inv_freq = _make_inv_freq(dim)
    kx, kp, kx2, kp2 = jax.random.split(key, 4)
    x = jax.random.normal(kx, (B, S, hidden), dtype=jnp.float32)  # dtype only
    position_ids = jnp.tile(jnp.arange(S, dtype=jnp.int32)[None, :], (B, 1))

    cos, sin = internlm2_rotary_embedding(x, position_ids, inv_freq)
    cos = jax.block_until_ready(cos)
    sin = jax.block_until_ready(sin)
    cos_ref, sin_ref = _reference(x, position_ids, inv_freq)
    assert cos.shape == (B, S, dim) and sin.shape == (B, S, dim)
    assert cos.dtype == x.dtype and sin.dtype == x.dtype
    assert jnp.allclose(cos, cos_ref, atol=1e-5, rtol=1e-5)
    assert jnp.allclose(sin, sin_ref, atol=1e-5, rtol=1e-5)

    # --- second check: zero-copy multi-tile path with a ragged last block --
    dim2, B2, S2 = 64, 2, 88
    inv_freq2 = _make_inv_freq(dim2)
    x2 = jax.random.normal(kx2, (B2, S2, 64), dtype=jnp.float32)
    position_ids2 = jax.random.randint(kp2, (B2, S2), 0, 64, dtype=jnp.int32)

    cos2, sin2 = internlm2_rotary_embedding(x2, position_ids2, inv_freq2,
                                            block_rows=2048)
    cos2 = jax.block_until_ready(cos2)
    sin2 = jax.block_until_ready(sin2)
    cos2_ref, sin2_ref = _reference(x2, position_ids2, inv_freq2)
    assert cos2.shape == (B2, S2, dim2) and sin2.shape == (B2, S2, dim2)
    assert jnp.allclose(cos2, cos2_ref, atol=1e-4, rtol=1e-4)
    assert jnp.allclose(sin2, sin2_ref, atol=1e-4, rtol=1e-4)

    print("KERNEL_OK")
</pallas_src>

<mosaic_0001>
module attributes {stable_mosaic.version = 11 : i64} {
  func.func @_rope_kernel(%arg0: i32, %arg1: memref<8x4xi32, #tpu.memory_space<vmem>>, %arg2: memref<8x4xi32, #tpu.memory_space<vmem>>, %arg3: memref<1x16xf32, #tpu.memory_space<vmem>>, %arg4: memref<16x128xf32, #tpu.memory_space<vmem>>, %arg5: memref<16x128xf32, #tpu.memory_space<vmem>>) attributes {dimension_semantics = [#tpu.dimension_semantics<parallel>], iteration_bounds = array<i64: 1>, scalar_prefetch = 0 : i64, scratch_operands = 0 : i64, tpu.core_type = #tpu.core_type<tc>, window_params = [{transform_indices = @transform_0, window_bounds = array<i64: 8, 4>}, {transform_indices = @transform_1, window_bounds = array<i64: 8, 4>}, {pipeline_mode = #tpu.pipeline_mode<synchronous>, transform_indices = @transform_2, window_bounds = array<i64: 1, 16>}, {transform_indices = @transform_3, window_bounds = array<i64: 16, 128>}, {transform_indices = @transform_4, window_bounds = array<i64: 16, 128>}]} {
    %c0 = arith.constant 0 : index
    %c0_0 = arith.constant 0 : index
    %0 = vector.load %arg3[%c0, %c0_0] : memref<1x16xf32, #tpu.memory_space<vmem>>, vector<1x16xf32>
    %c0_1 = arith.constant 0 : index
    %c0_2 = arith.constant 0 : index
    %1 = vector.load %arg1[%c0_1, %c0_2] : memref<8x4xi32, #tpu.memory_space<vmem>>, vector<8x4xi32>
    %2 = arith.sitofp %1 : vector<8x4xi32> to vector<8x4xf32>
    %c0_3 = arith.constant 0 : index
    %c0_4 = arith.constant 0 : index
    %3 = vector.load %arg2[%c0_3, %c0_4] : memref<8x4xi32, #tpu.memory_space<vmem>>, vector<8x4xi32>
    %4 = arith.sitofp %3 : vector<8x4xi32> to vector<8x4xf32>
    %5 = vector.extract_strided_slice %2 {offsets = [0, 0], sizes = [8, 1], strides = [1, 1]} : vector<8x4xf32> to vector<8x1xf32>
    %6 = vector.broadcast %5 : vector<8x1xf32> to vector<8x16xf32>
    %7 = vector.broadcast %0 : vector<1x16xf32> to vector<8x16xf32>
    %8 = arith.mulf %6, %7 : vector<8x16xf32>
    %9 = vector.extract_strided_slice %2 {offsets = [0, 1], sizes = [8, 1], strides = [1, 1]} : vector<8x4xf32> to vector<8x1xf32>
    %10 = vector.broadcast %9 : vector<8x1xf32> to vector<8x16xf32>
    %11 = vector.broadcast %0 : vector<1x16xf32> to vector<8x16xf32>
    %12 = arith.mulf %10, %11 : vector<8x16xf32>
    %13 = vector.extract_strided_slice %2 {offsets = [0, 2], sizes = [8, 1], strides = [1, 1]} : vector<8x4xf32> to vector<8x1xf32>
    %14 = vector.broadcast %13 : vector<8x1xf32> to vector<8x16xf32>
    %15 = vector.broadcast %0 : vector<1x16xf32> to vector<8x16xf32>
    %16 = arith.mulf %14, %15 : vector<8x16xf32>
    %17 = vector.extract_strided_slice %2 {offsets = [0, 3], sizes = [8, 1], strides = [1, 1]} : vector<8x4xf32> to vector<8x1xf32>
    %18 = vector.broadcast %17 : vector<8x1xf32> to vector<8x16xf32>
    %19 = vector.broadcast %0 : vector<1x16xf32> to vector<8x16xf32>
    %20 = arith.mulf %18, %19 : vector<8x16xf32>
    %21 = vector.extract_strided_slice %4 {offsets = [0, 0], sizes = [8, 1], strides = [1, 1]} : vector<8x4xf32> to vector<8x1xf32>
    %22 = vector.broadcast %21 : vector<8x1xf32> to vector<8x16xf32>
    %23 = vector.broadcast %0 : vector<1x16xf32> to vector<8x16xf32>
    %24 = arith.mulf %22, %23 : vector<8x16xf32>
    %25 = vector.extract_strided_slice %4 {offsets = [0, 1], sizes = [8, 1], strides = [1, 1]} : vector<8x4xf32> to vector<8x1xf32>
    %26 = vector.broadcast %25 : vector<8x1xf32> to vector<8x16xf32>
    %27 = vector.broadcast %0 : vector<1x16xf32> to vector<8x16xf32>
    %28 = arith.mulf %26, %27 : vector<8x16xf32>
    %29 = vector.extract_strided_slice %4 {offsets = [0, 2], sizes = [8, 1], strides = [1, 1]} : vector<8x4xf32> to vector<8x1xf32>
    %30 = vector.broadcast %29 : vector<8x1xf32> to vector<8x16xf32>
    %31 = vector.broadcast %0 : vector<1x16xf32> to vector<8x16xf32>
    %32 = arith.mulf %30, %31 : vector<8x16xf32>
    %33 = vector.extract_strided_slice %4 {offsets = [0, 3], sizes = [8, 1], strides = [1, 1]} : vector<8x4xf32> to vector<8x1xf32>
    %34 = vector.broadcast %33 : vector<8x1xf32> to vector<8x16xf32>
    %35 = vector.broadcast %0 : vector<1x16xf32> to vector<8x16xf32>
    %36 = arith.mulf %34, %35 : vector<8x16xf32>
    %37 = tpu.concatenate %8, %12, %16, %20, %24, %28, %32, %36 in 1 : vector<8x16xf32>, vector<8x16xf32>, vector<8x16xf32>, vector<8x16xf32>, vector<8x16xf32>, vector<8x16xf32>, vector<8x16xf32>, vector<8x16xf32> -> vector<8x128xf32>
    %38 = math.cos %37 : vector<8x128xf32>
    %39 = math.sin %37 : vector<8x128xf32>
    %40 = vector.extract_strided_slice %38 {offsets = [0, 0], sizes = [8, 16], strides = [1, 1]} : vector<8x128xf32> to vector<8x16xf32>
    %41 = vector.extract_strided_slice %38 {offsets = [0, 16], sizes = [8, 16], strides = [1, 1]} : vector<8x128xf32> to vector<8x16xf32>
    %42 = vector.extract_strided_slice %38 {offsets = [0, 32], sizes = [8, 16], strides = [1, 1]} : vector<8x128xf32> to vector<8x16xf32>
    %43 = vector.extract_strided_slice %38 {offsets = [0, 48], sizes = [8, 16], strides = [1, 1]} : vector<8x128xf32> to vector<8x16xf32>
    %44 = tpu.concatenate %40, %40, %41, %41, %42, %42, %43, %43 in 1 : vector<8x16xf32>, vector<8x16xf32>, vector<8x16xf32>, vector<8x16xf32>, vector<8x16xf32>, vector<8x16xf32>, vector<8x16xf32>, vector<8x16xf32> -> vector<8x128xf32>
    %c0_5 = arith.constant 0 : index
    %c0_6 = arith.constant 0 : index
    %45 = vector.load %arg4[%c0_5, %c0_6] : memref<16x128xf32, #tpu.memory_space<vmem>>, vector<8x128xf32>
    tpu.vector_store %arg4[%c0_5, %c0_6], %44 {strides = array<i32>} : memref<16x128xf32, #tpu.memory_space<vmem>>, vector<8x128xf32>,
    %46 = vector.extract_strided_slice %38 {offsets = [0, 64], sizes = [8, 16], strides = [1, 1]} : vector<8x128xf32> to vector<8x16xf32>
    %47 = vector.extract_strided_slice %38 {offsets = [0, 80], sizes = [8, 16], strides = [1, 1]} : vector<8x128xf32> to vector<8x16xf32>
    %48 = vector.extract_strided_slice %38 {offsets = [0, 96], sizes = [8, 16], strides = [1, 1]} : vector<8x128xf32> to vector<8x16xf32>
    %49 = vector.extract_strided_slice %38 {offsets = [0, 112], sizes = [8, 16], strides = [1, 1]} : vector<8x128xf32> to vector<8x16xf32>
    %50 = tpu.concatenate %46, %46, %47, %47, %48, %48, %49, %49 in 1 : vector<8x16xf32>, vector<8x16xf32>, vector<8x16xf32>, vector<8x16xf32>, vector<8x16xf32>, vector<8x16xf32>, vector<8x16xf32>, vector<8x16xf32> -> vector<8x128xf32>
    %c8 = arith.constant 8 : index
    %c0_7 = arith.constant 0 : index
    %51 = vector.load %arg4[%c8, %c0_7] : memref<16x128xf32, #tpu.memory_space<vmem>>, vector<8x128xf32>
    tpu.vector_store %arg4[%c8, %c0_7], %50 {strides = array<i32>} : memref<16x128xf32, #tpu.memory_space<vmem>>, vector<8x128xf32>,
    %52 = vector.extract_strided_slice %39 {offsets = [0, 0], sizes = [8, 16], strides = [1, 1]} : vector<8x128xf32> to vector<8x16xf32>
    %53 = vector.extract_strided_slice %39 {offsets = [0, 16], sizes = [8, 16], strides = [1, 1]} : vector<8x128xf32> to vector<8x16xf32>
    %54 = vector.extract_strided_slice %39 {offsets = [0, 32], sizes = [8, 16], strides = [1, 1]} : vector<8x128xf32> to vector<8x16xf32>
    %55 = vector.extract_strided_slice %39 {offsets = [0, 48], sizes = [8, 16], strides = [1, 1]} : vector<8x128xf32> to vector<8x16xf32>
    %56 = tpu.concatenate %52, %52, %53, %53, %54, %54, %55, %55 in 1 : vector<8x16xf32>, vector<8x16xf32>, vector<8x16xf32>, vector<8x16xf32>, vector<8x16xf32>, vector<8x16xf32>, vector<8x16xf32>, vector<8x16xf32> -> vector<8x128xf32>
    %c0_8 = arith.constant 0 : index
    %c0_9 = arith.constant 0 : index
    %57 = vector.load %arg5[%c0_8, %c0_9] : memref<16x128xf32, #tpu.memory_space<vmem>>, vector<8x128xf32>
    tpu.vector_store %arg5[%c0_8, %c0_9], %56 {strides = array<i32>} : memref<16x128xf32, #tpu.memory_space<vmem>>, vector<8x128xf32>,
    %58 = vector.extract_strided_slice %39 {offsets = [0, 64], sizes = [8, 16], strides = [1, 1]} : vector<8x128xf32> to vector<8x16xf32>
    %59 = vector.extract_strided_slice %39 {offsets = [0, 80], sizes = [8, 16], strides = [1, 1]} : vector<8x128xf32> to vector<8x16xf32>
    %60 = vector.extract_strided_slice %39 {offsets = [0, 96], sizes = [8, 16], strides = [1, 1]} : vector<8x128xf32> to vector<8x16xf32>
    %61 = vector.extract_strided_slice %39 {offsets = [0, 112], sizes = [8, 16], strides = [1, 1]} : vector<8x128xf32> to vector<8x16xf32>
    %62 = tpu.concatenate %58, %58, %59, %59, %60, %60, %61, %61 in 1 : vector<8x16xf32>, vector<8x16xf32>, vector<8x16xf32>, vector<8x16xf32>, vector<8x16xf32>, vector<8x16xf32>, vector<8x16xf32>, vector<8x16xf32> -> vector<8x128xf32>
    %c8_10 = arith.constant 8 : index
    %c0_11 = arith.constant 0 : index
    %63 = vector.load %arg5[%c8_10, %c0_11] : memref<16x128xf32, #tpu.memory_space<vmem>>, vector<8x128xf32>
    tpu.vector_store %arg5[%c8_10, %c0_11], %62 {strides = array<i32>} : memref<16x128xf32, #tpu.memory_space<vmem>>, vector<8x128xf32>,
    return
  }
  func.func @transform_0(%arg0: i32) -> (i32, i32) {
    %c2_i32 = arith.constant 2 : i32
    %0 = arith.muli %c2_i32, %arg0 : i32
    %c0_i32 = arith.constant 0 : i32
    %c0_i32_0 = arith.constant 0 : i32
    return %0, %c0_i32 : i32, i32
  }
  func.func @transform_1(%arg0: i32) -> (i32, i32) {
    %c2_i32 = arith.constant 2 : i32
    %0 = arith.muli %c2_i32, %arg0 : i32
    %c1_i32 = arith.constant 1 : i32
    %1 = arith.addi %0, %c1_i32 : i32
    %c0_i32 = arith.constant 0 : i32
    %c0_i32_0 = arith.constant 0 : i32
    return %1, %c0_i32 : i32, i32
  }
  func.func @transform_2(%arg0: i32) -> (i32, i32) {
    %c0_i32 = arith.constant 0 : i32
    %c0_i32_0 = arith.constant 0 : i32
    %c0_i32_1 = arith.constant 0 : i32
    return %c0_i32, %c0_i32_0 : i32, i32
  }
  func.func @transform_3(%arg0: i32) -> (i32, i32) {
    %c0_i32 = arith.constant 0 : i32
    %c0_i32_0 = arith.constant 0 : i32
    return %arg0, %c0_i32 : i32, i32
  }
  func.func @transform_4(%arg0: i32) -> (i32, i32) {
    %c0_i32 = arith.constant 0 : i32
    %c0_i32_0 = arith.constant 0 : i32
    return %arg0, %c0_i32 : i32, i32
  }
}

</mosaic_0001>

<bundles_post_ra>
// kernel: tpu_custom_call.1
= control target key start
LH: loop header
LB: loop body
LE: loop exit
PB: predicated region body
PF: predicated region fallthrough
CT: control target
= control target key end

     0   :  { %10 = vsyncpa [#allocation3], 0  ;;  %v570_v1 = vmov 3   ;;  %v571_v2 = vmov 1   ;;  %s719_s0 = inlined_call_operand.vmem [shape: s32[16,4], index: 0, kind: input, shape index: {}]   ;;  %s720_s1 = inlined_call_operand.vmem [shape: s32[16,4], index: 1, kind: input, shape index: {}]   ;;  %s721_s2 = inlined_call_operand.vmem [shape: f32[1,16], index: 2, kind: input, shape index: {}]   ;;  %s722_s3 = inlined_call_operand.hbm [shape: f32[16,128], index: 3, kind: output, shape index: {0}]   ;;  %s723_s4 = inlined_call_operand.hbm [shape: f32[16,128], index: 4, kind: output, shape index: {1}]  }
   0x1   :  { %v58_v0 = vld [vmem:[%s719_s0] sm:$0xff]  ;;  %516 = vset.pattern.permute.xlu1 %v570_v1  ;;  %514 = vset.pattern.permute.xlu0 %v571_v2  ;;  %v479_v4 = vld [vmem:[%s720_s1 + $0x8] sm:$0xff] }
   0x2   :  { %v59_v3 = vcvt.s32.f32 %v58_v0 }
   0x3   :  { %11 = vsyncpa [#allocation5], 0  ;;  %v61_v5 = vcvt.s32.f32 %v479_v4  ;;  %v572_v6 = vmov 0   ;;  %v573_v7 = vmov 2   ;;  %v480_v8 = vld [vmem:[%s721_s2] ss:$0 sm:$0xff] }
   0x4   :  { %85 = vperm.xlu1 %516, %v59_v3   ;;  %75 = vperm.xlu0 %514, %v59_v3   ;;  %s574_s19 = smov 48   ;;  %s575_s20 = smov 16   ;;  %vm138_vm0 = vcmask 130048   ;;  %vm140_vm1 = vcmask 261120   ;;  %vm142_vm2 = vcmask 392192   ;;  %vm144_vm3 = vcmask 523264  }
   0x5   :  { %s576_s21 = smov 32   ;;  %s577_s2 = smov 64   ;;  %vm146_vm4 = vcmask 654336   ;;  %vm148_vm5 = vcmask 785408   ;;  %vm150_vm6 = vcmask 916480  }
   0x6   :  { %s578_s22 = smov 80   ;;  %s579_s23 = smov 96   ;;  %v581_v49 = vmov 683565275   ;;  %v582_v51 = vmov 2475754826  }
   0x7   :  { %s580_s24 = smov 112   ;;  %v583_v54 = vmov 2131351028   ;;  %v584_v57 = vmov 2102212464   ;;  %s587_s25 = smov [#allocation2]  }
   0x8   :  { %517 = vset.pattern.permute.xlu1 %v572_v6  ;;  %515 = vset.pattern.permute.xlu0 %v573_v7  ;;  %v585_v60 = vmov 920167782   ;;  %v586_v63 = vmov 1326507024   ;;  %s440_s26 = sshll.u32 %s587_s25, 4  ;;  %s588_s27 = smov [#allocation4]   ;;  %s441_s26 = int_to_ptr.vmem [resolvable:$true] %s440_s26 }
   0x9   :  { %91 = vperm.xlu1 %517, %v61_v5   ;;  %80 = vperm.xlu0 %515, %v59_v3   ;;  %s452_s28 = sshll.u32 %s588_s27, 4  ;;  %s526_s29 = scalar_lea.vmem %s441_s26, 256  ;;  %s453_s28 = int_to_ptr.vmem [resolvable:$true] %s452_s28 }
   0xa   :  { %p527_p0 = scmp.ne.s32.totalorder %s441_s26, %s526_s29  ;;  %p531_p1 = scmp.lt.s32.totalorder %s441_s26, %s441_s26 }
   0xb   :  { %p532_p2 = scmp.lt.s32.totalorder %s526_s29, %s526_s29 }
   0xd   :  { %518 = vset.pattern.permute.xlu1 %v571_v2  ;;  %101 = vperm.xlu0 %515, %v61_v5   ;;  %p533_p3 = por %p532_p2, %p531_p1 }
   0xe   :  { %96 = vperm.xlu1 %518, %v61_v5  }
   0xf   :  { %p534_p4 = pnand %p533_p3, %p527_p0 }
  0x11   :  { %520 = vset.pattern.permute.xlu0 %v572_v6 }
  0x12   :  { %519 = vset.pattern.permute.xlu1 %v570_v1  ;;  %64 = vperm.xlu0 %520, %v59_v3  }
  0x13   :  { %106 = vperm.xlu1 %519, %v61_v5  }
  0x16   :  { %521 = vset.pattern.permute.xlu0 %v570_v1 }
  0x7f   :  { %v86_v9 = vpop.permute.xlu1 %85  ;;  %v76_v10 = vpop.permute.xlu0 %75 }
  0x80   :  { %v88_v11 = vmul.f32 %v480_v8, %v86_v9  ;;  %v78_v12 = vmul.f32 %v480_v8, %v76_v10 }
  0x82   :  { %119 = vrot.lane.b32.xlu0 %v88_v11, %s574_s19  ;;  %111 = vrot.lane.b32.xlu1 %v78_v12, %s575_s20 }
  0x84   :  { %v92_v13 = vpop.permute.xlu1 %91  ;;  %v81_v14 = vpop.permute.xlu0 %80 }
  0x85   :  { %v83_v15 = vmul.f32 %v480_v8, %v81_v14  ;;  %v94_v16 = vmul.f32 %v480_v8, %v92_v13 }
  0x87   :  { %115 = vrot.lane.b32.xlu1 %v83_v15, %s576_s21 }
  0x88   :  { %v102_v18 = vpop.permute.xlu0 %101 }
  0x89   :  { %v97_v17 = vpop.permute.xlu1 %96  ;;  %v104_v20 = vmul.f32 %v480_v8, %v102_v18 }
  0x8a   :  { %v99_v19 = vmul.f32 %v480_v8, %v97_v17 }
  0x8b   :  { %123 = vrot.lane.b32.xlu1 %v94_v16, %s577_s2 }
  0x8c   :  { %127 = vrot.lane.b32.xlu0 %v99_v19, %s578_s22 }
  0x8d   :  { %v65_v23 = vpop.permute.xlu0 %64 }
  0x8e   :  { %v107_v21 = vpop.permute.xlu1 %106  ;;  %v73_v25 = vmul.f32 %v480_v8, %v65_v23 }
  0x8f   :  { %v109_v22 = vmul.f32 %v480_v8, %v107_v21  ;;  %131 = vrot.lane.b32.xlu1 %v104_v20, %s579_s23 }
  0x91   :  { %135 = vrot.lane.b32.xlu0 %v109_v22, %s580_s24 }
  0xf4   :  { %v112_v24 = vpop.permute.xlu1 %111  ;;  %v120_v28 = vpop.permute.xlu0 %119 }
  0xf5   :  { %v139_v26 = vsel %vm138_vm0, %v73_v25, %v112_v24 }
  0xf9   :  { %v116_v27 = vpop.permute.xlu1 %115 }
  0xfa   :  { %v141_v29 = vsel %vm140_vm1, %v139_v26, %v116_v27 }
  0xfb   :  { %v143_v31 = vsel %vm142_vm2, %v141_v29, %v120_v28 }
  0xfd   :  { %v124_v30 = vpop.permute.xlu1 %123 }
  0xfe   :  { %v145_v32 = vsel %vm144_vm3, %v143_v31, %v124_v30  ;;  %v128_v33 = vpop.permute.xlu0 %127 }
  0xff   :  { %v147_v34 = vsel %vm146_vm4, %v145_v32, %v128_v33 }
 0x101   :  { %v132_v35 = vpop.permute.xlu1 %131 }
 0x102   :  { %v149_v36 = vsel %vm148_vm5, %v147_v34, %v132_v35 }
 0x103   :  { %v136_v37 = vpop.permute.xlu0 %135 }
 0x104   :  { %v639_v38 = vsel %vm150_vm6, %v149_v36, %v136_v37 }
 0x105   :  { %v155_v39 = vand.u32 2139095040, %v639_v38  ;;  %v152_v43 = vand.u32 2147483647, %v639_v38  ;;  %vm154_vm14 = vcmp.lt.s32.totalorder %v639_v38, 0 }
 0x107   :  { %v156_v40 = vshrl.u32 %v155_v39, 23  ;;  %v159_v46 = vand.u32 8388607, %v152_v43  ;;  %vm153_vm15 = vcmp.le.f32.partialorder %v152_v43, 0.7853982 }
 0x109   :  { %v481_v41 = vadd.s32 4294967169, %v156_v40  ;;  %v160_v1 = vor.u32 8388608, %v159_v46 }
 0x10b   :  { %v162_v42 = vadd.s32 1, %v481_v41  ;;  %v200_v15 = vshll.u32 %v160_v1, 8 }
 0x10d   :  { %vm163_vm7 = vcmp.gt.s32.totalorder %v162_v42, 0 }
 0x10e   :  { %v164_v44 = vsel %vm163_vm7, %v162_v42, 0 }
 0x10f   :  { %v166_v45 = vand.u32 31, %v164_v44  ;;  %v165_v48 = vshrl.u32 %v164_v44, 5 }
 0x111   :  { %v167_v47 = vsub.s32 32, %v166_v45  ;;  %v169_v50 = vshll.u32 %v581_v49, %v166_v45  ;;  %v172_v52 = vshll.u32 %v582_v51, %v166_v45  ;;  %v175_v56 = vshll.u32 %v583_v54, %v166_v45 }
 0x112   :  { %v178_v59 = vshll.u32 %v584_v57, %v166_v45  ;;  %v181_v62 = vshll.u32 %v585_v60, %v166_v45  ;;  %vm184_vm8 = vcmp.lt.s32.totalorder %v165_v48, 1  ;;  %vm187_vm9 = vcmp.lt.s32.totalorder %v165_v48, 4 }
 0x113   :  { %v170_v53 = vshrl.u32 %v582_v51, %v167_v47  ;;  %v173_v55 = vshrl.u32 %v583_v54, %v167_v47  ;;  %v176_v58 = vshrl.u32 %v584_v57, %v167_v47  ;;  %v179_v61 = vshrl.u32 %v585_v60, %v167_v47 }
 0x114   :  { %v182_v0 = vshrl.u32 %v586_v63, %v167_v47  ;;  %v168_v10 = vshrl.u32 %v581_v49, %v167_v47  ;;  %vm186_vm10 = vcmp.lt.s32.totalorder %v165_v48, 3  ;;  %vm185_vm11 = vcmp.lt.s32.totalorder %v165_v48, 2 }
 0x115   :  { %v171_v2 = vor.u32 %v170_v53, %v169_v50  ;;  %v174_v3 = vor.u32 %v173_v55, %v172_v52  ;;  %v177_v4 = vor.u32 %v176_v58, %v175_v56  ;;  %v180_v5 = vor.u32 %v179_v61, %v178_v59 }
 0x116   :  { %v183_v6 = vor.u32 %v182_v0, %v181_v62 }
 0x117   :  { %v189_v7 = vsel %vm187_vm9, %v177_v4, 2102212464  ;;  %v192_v8 = vsel %vm184_vm8, %v171_v2, %v174_v3  ;;  %v196_v9 = vsel %vm184_vm8, %v174_v3, %v177_v4  ;;  %v193_v11 = vsel %vm187_vm9, %v180_v5, 920167782 }
 0x118   :  { %v197_v12 = vsel %vm187_vm9, %v183_v6, 1326507024  ;;  %v194_v13 = vsel %vm186_vm10, %v177_v4, %v193_v11  ;;  %v188_v16 = vsel %vm184_vm8, %v168_v10, %v171_v2  ;;  %v190_v17 = vsel %vm186_vm10, %v174_v3, %v189_v7 }
 0x119   :  { %v198_v14 = vsel %vm186_vm10, %v180_v5, %v197_v12  ;;  %v195_v18 = vsel %vm185_vm11, %v192_v8, %v194_v13  ;;  %v191_v24 = vsel %vm185_vm11, %v188_v16, %v190_v17 }
 0x11a   :  { %v199_v19 = vsel %vm185_vm11, %v196_v9, %v198_v14  ;;  %v648_v22 = vmul.u32.u64.low %v200_v15, %v195_v18  ;;  %v649_v23 = vmul.u32.u64.high %v200_v15, %v195_v18, %v648_v22  ;;  %v207_v26 = vmul.u32 %v200_v15, %v191_v24 }
 0x11b   :  { %v645_v20 = vmul.u32.u64.low %v200_v15, %v199_v19  ;;  %v646_v21 = vmul.u32.u64.high %v200_v15, %v199_v19, %v645_v20 }
 0x11c   :  { %v210_v25 = vadd.s32 1, %v649_v23 }
 0x11d   :  { %vm209_vm12 = vc.u32 %v646_v21, %v648_v22  ;;  %v208_v39 = vadd.s32 %v648_v22, %v646_v21 }
 0x11e   :  { %v211_v27 = vsel %vm209_vm12, %v210_v25, %v649_v23 }
 0x11f   :  { %v212_v28 = vadd.s32 %v211_v27, %v207_v26 }
 0x121   :  { %v213_v29 = vadd.s32 536870912, %v212_v28 }
 0x123   :  { %v214_v30 = vshrl.u32 %v213_v29, 30 }
 0x125   :  { %v215_v31 = vshll.u32 %v214_v30, 30  ;;  %v238_v53 = vsub.s32 4, %v214_v30 }
 0x127   :  { %v216_v32 = vsub.s32 %v212_v28, %v215_v31  ;;  %v239_v56 = vsel %vm154_vm14, %v238_v53, %v214_v30 }
 0x128   :  { %v241_v57 = vsel %vm153_vm15, 0, %v239_v56 }
 0x129   :  { %v218_v33 = vsub.s32 0, %v216_v32  ;;  %v348_v58 = vadd.s32 3, %v241_v57  ;;  %v245_v59 = vand.u32 3, %v241_v57 }
 0x12b   :  { %v482_v34 = vmin.u32 %v218_v33, %v216_v32  ;;  %v349_v60 = vand.u32 3, %v348_v58  ;;  %vm250_vm7 = vcmp.eq.s32.totalorder %v245_v59, 2  ;;  %vm247_vm9 = vcmp.eq.s32.totalorder %v245_v59, 0 }
 0x12c   :  { %vm246_vm11 = vcmp.lt.s32.totalorder %v245_v59, 2 }
 0x12d   :  { %v220_v35 = vclz %v482_v34  ;;  %vm354_vm8 = vcmp.eq.s32.totalorder %v349_v60, 2  ;;  %vm351_vm10 = vcmp.eq.s32.totalorder %v349_v60, 0  ;;  %vm350_vm12 = vcmp.lt.s32.totalorder %v349_v60, 2 }
 0x12f   :  { %v483_v36 = vadd.s32 4294967294, %v220_v35 }
 0x131   :  { %vm484_vm13 = vcmp.lt.s32.totalorder %v483_v36, 0 }
 0x132   :  { %v223_v37 = vsel %vm484_vm13, 0, %v483_v36  ;;  %vm244_vm13 = vweird.f32 %v639_v38 }
 0x133   :  { %v224_v40 = vsub.s32 32, %v223_v37  ;;  %v228_v41 = vsub.s32 4294967266, %v223_v37  ;;  %v225_v42 = vshll.u32 %v216_v32, %v223_v37 }
 0x135   :  { %v226_v44 = vshrl.u32 %v208_v39, %v224_v40  ;;  %v229_v45 = vadd.s32 127, %v228_v41 }
 0x137   :  { %v227_v46 = vor.u32 %v226_v44, %v225_v42  ;;  %v230_v47 = vshll.u32 %v229_v45, 23 }
 0x139   :  { %v231_v48 = vor.u32 4788187, %v230_v47  ;;  %v234_v50 = vcvt.s32.f32 %v227_v46 }
 0x13b   :  { %v232_v49 = vand.u32 2147483647, %v231_v48 }
 0x13d   :  { %v235_v51 = vmul.f32 %v234_v50, %v232_v49 }
 0x13f   :  { %v236_v52 = vxor.u32 2147483648, %v235_v51 }
 0x141   :  { %v237_v54 = vsel %vm154_vm14, %v236_v52, %v235_v51 }
 0x142   :  { %v240_v55 = vsel %vm153_vm15, %v639_v38, %v237_v54 }
 0x143   :  { %522 = vcosq.f32 %v240_v55 }
 0x144   :  { %524 = vsinq.f32 %v240_v55 }
 0x150   :  { %v523_v61 = vpop.eup %522 }
 0x151   :  { %v525_v62 = vpop.eup %524  ;;  %v251_v63 = vxor.u32 2147483648, %v523_v61 }
 0x152   :  { %v248_v0 = vxor.u32 2147483648, %v525_v62 }
 0x153   :  { %v252_v1 = vsel %vm250_vm7, %v251_v63, %v525_v62  ;;  %v356_v43 = vsel %vm354_vm8, %v251_v63, %v525_v62 }
 0x154   :  { %v249_v2 = vsel %vm247_vm9, %v523_v61, %v248_v0  ;;  %v353_v3 = vsel %vm351_vm10, %v523_v61, %v248_v0 }
 0x155   :  { %v253_v4 = vsel %vm246_vm11, %v249_v2, %v252_v1  ;;  %v357_v5 = vsel %vm350_vm12, %v353_v3, %v356_v43 }
 0x156   :  { %v254_v6 = vsel %vm244_vm13, nan, %v253_v4  ;;  %v660_v7 = vsel %vm244_vm13, nan, %v357_v5 }
 0x157   :  { %369 = vrot.lane.b32.xlu0 %v254_v6, %s577_s2  ;;  %360 = vrot.lane.b32.xlu1 %v254_v6, %s575_s20 }
 0x15b   :  { %398 = vrot.lane.b32.xlu0 %v660_v7, %s575_s20  ;;  %380 = vrot.lane.b32.xlu1 %v254_v6, %s578_s22 }
 0x15f   :  { %418 = vrot.lane.b32.xlu0 %v660_v7, %s578_s22  ;;  %407 = vrot.lane.b32.xlu1 %v660_v7, %s577_s2 }
 0x163   :  { %383 = vrot.lane.b32.xlu0 %v254_v6, %s579_s23  ;;  %363 = vrot.lane.b32.xlu1 %v254_v6, %s576_s21 }
 0x167   :  { %421 = vrot.lane.b32.xlu0 %v660_v7, %s579_s23  ;;  %401 = vrot.lane.b32.xlu1 %v660_v7, %s576_s21 }
 0x16b   :  { %386 = vrot.lane.b32.xlu0 %v254_v6, %s580_s24  ;;  %366 = vrot.lane.b32.xlu1 %v254_v6, %s574_s19 }
 0x16f   :  { %424 = vrot.lane.b32.xlu0 %v660_v7, %s580_s24  ;;  %404 = vrot.lane.b32.xlu1 %v660_v7, %s574_s19 }
 0x1c9   :  { %v370_v38 = vpop.permute.xlu0 %369  ;;  %v361_v8 = vpop.permute.xlu1 %360 }
 0x1ca   :  { %v372_v15 = vsel %vm138_vm0, %v254_v6, %v361_v8 }
 0x1cb   :  { %v373_v17 = vsel %vm140_vm1, %v372_v15, %v361_v8 }
 0x1cd   :  { %v399_v9 = vpop.permute.xlu0 %398  ;;  %v381_v10 = vpop.permute.xlu1 %380 }
 0x1ce   :  { %v389_v16 = vsel %vm138_vm0, %v370_v38, %v381_v10  ;;  %v410_v21 = vsel %vm138_vm0, %v660_v7, %v399_v9 }
 0x1cf   :  { %v390_v18 = vsel %vm140_vm1, %v389_v16, %v381_v10  ;;  %v411_v25 = vsel %vm140_vm1, %v410_v21, %v399_v9 }
 0x1d1   :  { %v419_v11 = vpop.permute.xlu0 %418  ;;  %v408_v12 = vpop.permute.xlu1 %407 }
 0x1d2   :  { %v427_v22 = vsel %vm138_vm0, %v408_v12, %v419_v11 }
 0x1d3   :  { %v428_v28 = vsel %vm140_vm1, %v427_v22, %v419_v11 }
 0x1d5   :  { %v384_v13 = vpop.permute.xlu0 %383  ;;  %v364_v14 = vpop.permute.xlu1 %363 }
 0x1d6   :  { %v391_v23 = vsel %vm142_vm2, %v390_v18, %v384_v13  ;;  %v374_v24 = vsel %vm142_vm2, %v373_v17, %v364_v14 }
 0x1d7   :  { %v392_v26 = vsel %vm144_vm3, %v391_v23, %v384_v13  ;;  %v375_v27 = vsel %vm144_vm3, %v374_v24, %v364_v14 }
 0x1d9   :  { %v422_v19 = vpop.permute.xlu0 %421  ;;  %v402_v20 = vpop.permute.xlu1 %401 }
 0x1da   :  { %v429_v31 = vsel %vm142_vm2, %v428_v28, %v422_v19  ;;  %v412_v32 = vsel %vm142_vm2, %v411_v25, %v402_v20 }
 0x1db   :  { %v430_v40 = vsel %vm144_vm3, %v429_v31, %v422_v19  ;;  %v413_v41 = vsel %vm144_vm3, %v412_v32, %v402_v20 }
 0x1dd   :  { %v387_v29 = vpop.permute.xlu0 %386  ;;  %v367_v30 = vpop.permute.xlu1 %366 }
 0x1de   :  { %v393_v33 = vsel %vm146_vm4, %v392_v26, %v387_v29  ;;  %v376_v34 = vsel %vm146_vm4, %v375_v27, %v367_v30 }
 0x1df   :  { %v394_v35 = vsel %vm148_vm5, %v393_v33, %v387_v29  ;;  %v377_v36 = vsel %vm148_vm5, %v376_v34, %v367_v30 }
 0x1e0   :  { %v395_v37 = vsel %vm150_vm6, %v394_v35, %v254_v6  ;;  %v378_v39 = vsel %vm150_vm6, %v377_v36, %v370_v38 }
 0x1e1   :  { %396 = vst [vmem:[#allocation2 + $0x8] sm:$0xff] %v395_v37  ;;  %379 = vst [vmem:[#allocation2] sm:$0xff] %v378_v39  ;;  %v425_v42 = vpop.permute.xlu0 %424  ;;  %v405_v44 = vpop.permute.xlu1 %404 }
 0x1e2   :  { %v431_v45 = vsel %vm146_vm4, %v430_v40, %v425_v42  ;;  %v414_v46 = vsel %vm146_vm4, %v413_v41, %v405_v44 }
 0x1e3   :  { %537 = shalt.err (!%p534_p4)
}
 0x1e4   :  { %s589_s30 = smov 128   ;;  %s590_s5 = smov 8   ;;  %v432_v47 = vsel %vm148_vm5, %v431_v45, %v425_v42  ;;  %v415_v48 = vsel %vm148_vm5, %v414_v46, %v405_v44 }
 0x1e5   :  { %446 = dma.vmem_to_hbm [thread:$0]  %s441_s26, 256, %s722_s3, [#allocation3], %s589_s30, %s589_s30, %s590_s5   ;;  %v433_v49 = vsel %vm150_vm6, %v432_v47, %v660_v7  ;;  %v416_v50 = vsel %vm150_vm6, %v415_v48, %v408_v12 }
 0x1e6   :  { %434 = vst [vmem:[#allocation4 + $0x8] sm:$0xff] %v433_v49  ;;  %417 = vst [vmem:[#allocation4] sm:$0xff] %v416_v50  ;;  %s546_s8 = scalar_lea.vmem %s453_s28, 256  ;;  %p551_p6 = scmp.lt.s32.totalorder %s453_s28, %s453_s28 }
 0x1e7   :  { %p547_p5 = scmp.ne.s32.totalorder %s453_s28, %s546_s8  ;;  %p552_p7 = scmp.lt.s32.totalorder %s546_s8, %s546_s8 }
 0x1e9   :  { %p553_p8 = por %p552_p7, %p551_p6 }
 0x1eb   :  { %p554_p9 = pnand %p553_p8, %p547_p5 }
 0x1ed   :  { %557 = shalt.err (!%p554_p9)
}
 0x1ee   :  { %458 = dma.vmem_to_hbm [thread:$0]  %s453_s28, 256, %s723_s4, [#allocation5], %s589_s30, %s589_s30, %s590_s5  }
 0x1ef   :  { %566 = dma.done.wait [#allocation3], 256  }
 0x1f0   :  { %567 = vsyncadd [#allocation3], 4294967040 }
 0x1f1   :  { %568 = dma.done.wait [#allocation5], 256  }
 0x1f2   :  { %569 = vsyncadd [#allocation5], 4294967040 }
 0x1f3   :  { %465 = vsyncpa [#allocation3], 1 }
 0x1f4   :  { %466 = vsyncpa [#allocation5], 1 }

</bundles_post_ra>
